<compile_context>
chip_gen: v7x
topology: tpu7x:2x2x1
jax: 0.10.0
libtpu: 0.0.40
codegen_flags: <defaults>
</compile_context>

<pallas_src>
import functools

import jax
import jax.numpy as jnp
import numpy as np
from jax.experimental import pallas as pl
from jax.experimental.pallas import tpu as pltpu

# Synthetic embedding_table_shapes (the real module gets this dict at __init__).
EMBEDDING_TABLE_SHAPES = {
    "cat_a": (100, 16),
    "cat_b": (50, 16),
    "cat_c": (37, 32),
}
DROPOUT_P = 0.2  # applied as eval-mode identity (see TODO in kernel)

# Beyond these, the dense block-diagonal matmul formulation stops making sense
# (VMEM residency on v7x's 64 MiB/TC is lost first); fall back to XLA gather.
_FUSED_KPAD_LIMIT = 4096
_FUSED_W_BYTES_LIMIT = 16 * 1024 * 1024


def _round_up(x, m):
    return ((x + m - 1) // m) * m


def _concat_emb_kernel(ids_ref, w_ref, out_ref, *, seg_rows):
    """ids_ref: (TB, T) int32 per-table LOCAL ids (padded rows = -1).
    w_ref: (Kpad, Epad) f32 fused block-diagonal table (table t at 128-aligned
    row offset, packed column offset). out_ref: (TB, Epad) f32."""
    tb = ids_ref.shape[0]
    ids = ids_ref[...]  # (TB, T) int32

    # Segment-local one-hot: one compare + one cast per 128-aligned segment.
    # Segments are disjoint by construction so concatenation is exact; padded
    # batch rows carry id = -1 which never matches the iota -> zero rows.
    segs = []
    for t, cpad in enumerate(seg_rows):
        seg_iota = jax.lax.broadcasted_iota(jnp.int32, (tb, cpad), 1)
        segs.append((ids[:, t:t + 1] == seg_iota).astype(jnp.float32))
    onehot = segs[0] if len(segs) == 1 else jnp.concatenate(segs, axis=1)

    # One MXU matmul, one unmasked lane-dense full-tile store.
    out_ref[...] = jnp.dot(onehot, w_ref[...],
                           preferred_element_type=jnp.float32)
    # TODO(synk): torch.nn.Dropout(p=0.2) is stochastic in training mode; here
    # it is applied as eval-mode identity. A training-mode version would use
    # pltpu.prng_seed + pltpu.stateful_bernoulli and scale by 1/(1-p).


def concatenated_embeddings(ids, tables, *, tb=512):
    """ids: (B, T) int32 (in-range per table). tables: list of (C_t, E_t) f32.

    Returns (B, sum_t E_t) float32 — per-table lookups concatenated on dim 1.
    """
    B, T = ids.shape
    assert T == len(tables)

    cards = [int(t.shape[0]) for t in tables]
    embs = [int(t.shape[1]) for t in tables]
    total_e = sum(embs)

    # 128-aligned per-table row segments inside the fused W (one-hot K dim);
    # embedding columns are packed (unpadded offsets) so the output layout is
    # exactly the concatenation.
    cpads = [_round_up(c, 128) for c in cards]
    kpad = sum(cpads)
    epad = _round_up(total_e, 128)
    w_bytes = kpad * epad * 4

    if kpad > _FUSED_KPAD_LIMIT or w_bytes > _FUSED_W_BYTES_LIMIT:
        # TODO(synk): production large-cardinality path = tables in HBM
        # (memory_space=pl.ANY) + PrefetchScalarGridSpec ids + double-buffered
        # per-row DMA gather; for now fall back to a plain XLA gather+concat.
        parts = [jnp.take(tab.astype(jnp.float32), ids[:, i], axis=0)
                 for i, tab in enumerate(tables)]
        return jnp.concatenate(parts, axis=1)

    # ---- Batch tiling ----
    tb = max(8, _round_up(int(tb), 8))
    # Keep grid length >= 2 whenever B allows it (v7x megacore: both TCs work).
    tb = min(tb, max(8, _round_up((B + 1) // 2, 8)))
    # Cap the (TB, Kpad) f32 one-hot intermediate at ~1 MiB (v5e vreg budget).
    tb = min(tb, max(8, (((1 << 20) // (kpad * 4)) // 8) * 8))
    b_pad = _round_up(B, tb)
    grid = (b_pad // tb,)

    # ---- Wrapper-side precompute (once, outside the kernel hot path) ----
    w = jnp.zeros((kpad, epad), dtype=jnp.float32)
    r_off, e_off = 0, 0
    for tab, cpad in zip(tables, cpads):
        c, e = tab.shape
        w = w.at[r_off:r_off + c, e_off:e_off + e].set(tab.astype(jnp.float32))
        r_off += cpad
        e_off += e

    # Local (per-table) ids, padded batch rows get -1 (never matches the iota).
    ids_pad = jnp.full((b_pad, T), -1, dtype=jnp.int32)
    ids_pad = ids_pad.at[:B, :].set(ids.astype(jnp.int32))

    kernel = functools.partial(_concat_emb_kernel, seg_rows=tuple(cpads))

    # VMEM budget from actual buffer sizes (double-buffered streams + one-hot),
    # with headroom; avoids blanket-reserving half of a v7x core's 64 MiB.
    ids_blk_bytes = tb * T * 4
    out_blk_bytes = tb * epad * 4
    onehot_bytes = tb * kpad * 4
    vmem_need = 2 * (w_bytes + ids_blk_bytes + out_blk_bytes) + onehot_bytes
    vmem_limit = min(max(4 << 20, int(1.5 * vmem_need) + (1 << 20)), 64 << 20)

    # Accurate scheduling hint: W fetched once (resident), ids slab, output.
    cost = pl.CostEstimate(
        flops=2 * b_pad * kpad * epad,
        transcendentals=0,
        bytes_accessed=w_bytes + b_pad * T * 4 + b_pad * epad * 4,
    )

    out_padded = pl.pallas_call(
        kernel,
        out_shape=jax.ShapeDtypeStruct((b_pad, epad), jnp.float32),
        grid=grid,
        in_specs=[
            # ids: batch-tiled, exactly T lanes (last dim == full array dim).
            pl.BlockSpec((tb, T), lambda i: (i, 0)),
            # fused W: constant index_map -> stays resident in VMEM.
            pl.BlockSpec((kpad, epad), lambda i: (0, 0)),
        ],
        out_specs=pl.BlockSpec((tb, epad), lambda i: (i, 0)),
        compiler_params=pltpu.CompilerParams(
            dimension_semantics=("parallel",),
            vmem_limit_bytes=vmem_limit,
        ),
        cost_estimate=cost,
    )(ids_pad, w)

    # Skip the trailing slice when no padding was added (pure layout plumbing).
    if b_pad == B and epad == total_e:
        return out_padded
    return out_padded[:B, :total_e]


def _reference(ids, tables):
    parts = [jnp.take(tab, ids[:, i], axis=0) for i, tab in enumerate(tables)]
    return jnp.concatenate(parts, axis=1)


if __name__ == "__main__":
    key = jax.random.PRNGKey(0)
    batch = 256  # exercises batch tiling: grid = (2,) with TB capped at 128
    shapes = list(EMBEDDING_TABLE_SHAPES.values())

    # Deterministic parameter init (torch.nn.Embedding default ~ N(0, 1)).
    keys = jax.random.split(key, len(shapes) + 1)
    tables = [
        jax.random.normal(keys[i], (cat, emb), dtype=jnp.float32)
        for i, (cat, emb) in enumerate(shapes)
    ]

    # Deterministic categorical indices, each column within its cardinality.
    id_keys = jax.random.split(keys[-1], len(shapes))
    id_cols = [
        jax.random.randint(id_keys[i], (batch, 1), 0, cat, dtype=jnp.int32)
        for i, (cat, _) in enumerate(shapes)
    ]
    ids = jnp.concatenate(id_cols, axis=1)  # (batch, num_tables) int32

    out = concatenated_embeddings(ids, tables)
    out = jax.block_until_ready(out)

    ref = _reference(ids, tables)
    assert out.shape == (batch, sum(e for _, e in shapes))
    assert out.dtype == jnp.float32
    assert jnp.allclose(out, ref, atol=1e-6), "mismatch vs reference gather"

    print("KERNEL_OK")
</pallas_src>

<mosaic_0001>
module attributes {stable_mosaic.version = 11 : i64} {
  func.func @_concat_emb_kernel(%arg0: i32, %arg1: memref<128x3xi32, #tpu.memory_space<vmem>>, %arg2: memref<384x128xf32, #tpu.memory_space<vmem>>, %arg3: memref<128x128xf32, #tpu.memory_space<vmem>>) attributes {dimension_semantics = [#tpu.dimension_semantics<parallel>], iteration_bounds = array<i64: 2>, scalar_prefetch = 0 : i64, scratch_operands = 0 : i64, tpu.core_type = #tpu.core_type<tc>, window_params = [{transform_indices = @transform_0, window_bounds = array<i64: 128, 3>}, {pipeline_mode = #tpu.pipeline_mode<synchronous>, transform_indices = @transform_1, window_bounds = array<i64: 384, 128>}, {transform_indices = @transform_2, window_bounds = array<i64: 128, 128>}]} {
    %c0 = arith.constant 0 : index
    %c0_0 = arith.constant 0 : index
    %0 = vector.load %arg1[%c0, %c0_0] : memref<128x3xi32, #tpu.memory_space<vmem>>, vector<128x3xi32>
    %1 = tpu.iota {dimensions = array<i32: 1>} : vector<128x128xi32>
    %2 = vector.extract_strided_slice %0 {offsets = [0, 0], sizes = [128, 1], strides = [1, 1]} : vector<128x3xi32> to vector<128x1xi32>
    %3 = vector.broadcast %2 : vector<128x1xi32> to vector<128x128xi32>
    %4 = arith.cmpi eq, %3, %1 : vector<128x128xi32>
    %5 = arith.extui %4 : vector<128x128xi1> to vector<128x128xi32>
    %6 = arith.sitofp %5 : vector<128x128xi32> to vector<128x128xf32>
    %7 = tpu.iota {dimensions = array<i32: 1>} : vector<128x128xi32>
    %8 = vector.extract_strided_slice %0 {offsets = [0, 1], sizes = [128, 1], strides = [1, 1]} : vector<128x3xi32> to vector<128x1xi32>
    %9 = vector.broadcast %8 : vector<128x1xi32> to vector<128x128xi32>
    %10 = arith.cmpi eq, %9, %7 : vector<128x128xi32>
    %11 = arith.extui %10 : vector<128x128xi1> to vector<128x128xi32>
    %12 = arith.sitofp %11 : vector<128x128xi32> to vector<128x128xf32>
    %13 = tpu.iota {dimensions = array<i32: 1>} : vector<128x128xi32>
    %14 = vector.extract_strided_slice %0 {offsets = [0, 2], sizes = [128, 1], strides = [1, 1]} : vector<128x3xi32> to vector<128x1xi32>
    %15 = vector.broadcast %14 : vector<128x1xi32> to vector<128x128xi32>
    %16 = arith.cmpi eq, %15, %13 : vector<128x128xi32>
    %17 = arith.extui %16 : vector<128x128xi1> to vector<128x128xi32>
    %18 = arith.sitofp %17 : vector<128x128xi32> to vector<128x128xf32>
    %19 = tpu.concatenate %6, %12, %18 in 1 : vector<128x128xf32>, vector<128x128xf32>, vector<128x128xf32> -> vector<128x384xf32>
    %c0_1 = arith.constant 0 : index
    %c0_2 = arith.constant 0 : index
    %20 = vector.load %arg2[%c0_1, %c0_2] : memref<384x128xf32, #tpu.memory_space<vmem>>, vector<384x128xf32>
    %cst = arith.constant dense<0.000000e+00> : vector<128x128xf32>
    %21 = tpu.matmul %19, %20, %cst {dimension_numbers = #tpu.dot_dimension_numbers<[1], [0], [0], [1], [0, 0, 1, 1], [], []>} : vector<128x384xf32>, vector<384x128xf32>, vector<128x128xf32> -> vector<128x128xf32>
    %c0_3 = arith.constant 0 : index
    %c0_4 = arith.constant 0 : index
    %22 = vector.load %arg3[%c0_3, %c0_4] : memref<128x128xf32, #tpu.memory_space<vmem>>, vector<128x128xf32>
    tpu.vector_store %arg3[%c0_3, %c0_4], %21 {strides = array<i32>} : memref<128x128xf32, #tpu.memory_space<vmem>>, vector<128x128xf32>,
    return
  }
  func.func @transform_0(%arg0: i32) -> (i32, i32) {
    %c0_i32 = arith.constant 0 : i32
    %c0_i32_0 = arith.constant 0 : i32
    return %arg0, %c0_i32 : i32, i32
  }
  func.func @transform_1(%arg0: i32) -> (i32, i32) {
    %c0_i32 = arith.constant 0 : i32
    %c0_i32_0 = arith.constant 0 : i32
    %c0_i32_1 = arith.constant 0 : i32
    return %c0_i32, %c0_i32_0 : i32, i32
  }
  func.func @transform_2(%arg0: i32) -> (i32, i32) {
    %c0_i32 = arith.constant 0 : i32
    %c0_i32_0 = arith.constant 0 : i32
    return %arg0, %c0_i32 : i32, i32
  }
}

</mosaic_0001>

<bundles_post_ra>
// kernel: tpu_custom_call.1
= control target key start
LH: loop header
LB: loop body
LE: loop exit
PB: predicated region body
PF: predicated region fallthrough
CT: control target
= control target key end

     0   :  { %7 = vsyncpa [#allocation3], 0  ;;  %s1803_s0 = inlined_call_operand.vmem [shape: s32[256,3], index: 0, kind: input, shape index: {}]   ;;  %s1804_s1 = inlined_call_operand.hbm [shape: f32[384,128], index: 1, kind: input, shape index: {}]   ;;  %s1805_s2 = inlined_call_operand.hbm [shape: f32[256,128], index: 2, kind: output, shape index: {}]  }
   0x1   :  { %8 = vsyncpa [#allocation4], 0 }
   0x2   :  { %10 = vsyncpa [#allocation4 + $0x1], 0  ;;  %s1456_s9 = smov 0   ;;  %s1458_s10 = smov 0  }
   0x3   :  { %s1460_s11 = smov 0   ;;  %s1462_s12 = smov 0  }
   0x4 LB: > { %s1477_s13 = sadd.s32 4294967295, %s1429_s12   ;;  %s908_s14 = sadd.s32 4294967294, %s1429_s12   ;;  %s1429_s12 = sphi %s1462_s12, %s1821_s12   ;;  %s1425_s11 = sphi %s1460_s11, %s1820_s11   ;;  %s1421_s10 = sphi %s1458_s10, %s1819_s10   ;;  %s1417_s9 = sphi %s1456_s9, %s1818_s9  }
   0x5   : > { %s1481_s15 = sadd.s32 1, %s1429_s12   ;;  %s70_s16 = sadd.s32 1, %s1425_s11 }
   0x6   : > { %s67_s17 = ssub.s32 %s1429_s12, %s1481_s15  ;;  %p80_p0 = scmp.ne.s32.totalorder %s1425_s11, %s1421_s10 }
   0x7   : > { %p68_p1 = scmp.eq.s32.totalorder %s67_s17, 0  ;;  %p81_p2 = scmp.eq.s32.totalorder %s1477_s13, 1 }
   0x8   : > { %p86_p3 = scmp.ne.s32.totalorder %s1421_s10, %s1417_s9  ;;  %p87_p4 = scmp.eq.s32.totalorder %s908_s14, 1 }
   0x9   : > { %s1492_s18 = scalar_select %p68_p1, %s1425_s11, %s70_s16  }
   0xa   : > { %p1494_p5 = por %p81_p2, %p80_p0  ;;  %p1498_p6 = por %p87_p4, %p86_p3 }
   0xb   : > { %p909_p7 = scmp.ge.s32.totalorder %s1429_s12, 1  ;;  %p94_p8 = scmp.lt.s32.totalorder %s1429_s12, 3 }
   0xc   : > { %s1809_s19 = scalar_select %p1494_p5, 1, 0 }
   0xd   : > { %s1810_s20 = scalar_select %p1498_p6, 1, 0 }
   0xe   : > { %p1806_p9 = scmp.eq.s32.totalorder %s1477_s13, 0  ;;  %p1505_p10 = pnand %p909_p7, %p94_p8 }
   0xf   : > { %s1431_s22 = smov [#allocation2]   ;;  %s1335_s27 = scalar_lea.hbm %s1804_s1, 6144 }
  0x10   : > { %s1811_s21 = scalar_select %p1505_p10, 1, 0 }
  0x11   : > { %s106_s23 = sshll.u32 %s1431_s22, 4  ;;  %p1257_p11 = pneg %p1505_p10  ;;  %s107_s23 = int_to_ptr.vmem [resolvable:$true] %s106_s23 }
  0x12   : > { %p1336_p13 = scmp.ne.s32.totalorder %s1804_s1, %s1335_s27  ;;  %p1342_p3 = scmp.lt.u32.totalorder %s1335_s27, %s1804_s1 }
  0x13   : > { %p1513_p12 = pnand %p1806_p9, %p1257_p11 }
  0x15   : > { %p1337_p0 = pneg %p1513_p12 }
  0x17   : > { %p1338_p1 = pnand %p1337_p0, %p1336_p13 }
  0x19   : > { %p1339_p2 = pneg %p1338_p1 }
  0x1b   : > { %p1344_p4 = pnand %p1342_p3, %p1339_p2 }
  0x1d   : > { %1347 = shalt.err (!%p1344_p4)
}
  0x1e   : > { %s1348_s4 = scalar_lea.vmem %s107_s23, 6144  ;;  %p1356_p9 = scmp.lt.s32.totalorder %s107_s23, %s107_s23 }
  0x1f   : > { %p1349_p7 = scmp.ne.s32.totalorder %s107_s23, %s1348_s4  ;;  %p1357_p6 = scmp.lt.s32.totalorder %s1348_s4, %s1348_s4 }
  0x21   : > { %p1351_p8 = pnand %p1349_p7, %p1337_p0  ;;  %p1358_p5 = por %p1357_p6, %p1356_p9 }
  0x23   : > { %p1352_p11 = pneg %p1351_p8 }
  0x25   : > { %p1359_p10 = pnand %p1358_p5, %p1352_p11 }
  0x27   : > { %1362 = shalt.err (!%p1359_p10)
}
  0x28   : > { %s1432_s5 = smov 128   ;;  %s1433_s6 = smov 8  }
  0x29   : > { %1260 = dma.hbm_to_vmem [thread:$0]  (!%p1513_p12), %s1804_s1, 6144, %s107_s23, [#allocation3], %s1432_s5, %s1432_s5, %s1433_s6  }
  0x2a   : > { %p1813_p13 = scmp.ne.s32.totalorder %s1811_s21, 0 }
  0x2b   : > { %p1814_p1 = scmp.eq.s32.totalorder (!%p1813_p13), %s1477_s13, 0 }
  0x2c   : > { %131 = sbr.rel (%p1813_p13) target bundleno = 547 (0x223), region = 28 }
  0x33   : > { %1408 = dma.done.wait (%p1814_p1), [#allocation3], 6144   ;;  %p1815_p0 = pmov %p1814_p1 }
  0x34   : > { %s915_s14 = sshll.u32 %s1477_s13, 4  ;;  %v1434_v0 = vmov 1   ;;  %v1435_v3 = vmov 0   ;;  %v482_v5 = vld [vmem:[#allocation2 + $0x80] sm:$0xff]  ;;  %v483_v6 = vld [vmem:[#allocation2 + $0x88] sm:$0xff]  ;;  %v484_v10 = vld [vmem:[#allocation2 + $0x90] sm:$0xff] }
  0x35   : > { %1410 = vsyncadd (%p1815_p0), [#allocation3], 4294961152  ;;  %1311 = vset.pattern.permute.xlu1 %v1434_v0  ;;  %1309 = vset.pattern.permute.xlu0 %v1434_v0  ;;  %p154_p5 = scmp.lt.s32.totalorder %s915_s14, 31  ;;  %v466_v7 = vld [vmem:[#allocation2] sm:$0xff]  ;;  %v1187_v8 = vpack.c.bf16 %v483_v6, %v482_v5  ;;  %v467_v9 = vld [vmem:[#allocation2 + $0x8] sm:$0xff]  ;;  %s150_s23 = sand.u32 1, %s1421_s10  }
  0x36   : > { %v485_v11 = vld [vmem:[#allocation2 + $0x98] sm:$0xff]  ;;  %v1189_v12 = vpack.c.bf16 %v467_v9, %v466_v7  ;;  %v468_v14 = vld [vmem:[#allocation2 + $0x10] sm:$0xff]  ;;  %v486_v16 = vld [vmem:[#allocation2 + $0xa0] sm:$0xff]  ;;  %s914_s24 = sshll.u32 %s150_s23, 7  ;;  %s1018_s26 = sshll.u32 %s1477_s13, 11 }
  0x37   : > { %s1823_s14 = smov (!%p154_p5, %s915_s14), 31  ;;  %v1191_v13 = vpack.c.bf16 %v485_v11, %v484_v10  ;;  %v469_v15 = vld [vmem:[#allocation2 + $0x18] sm:$0xff]  ;;  %1188 = vmatprep.subr.bf16.mxu0 %v1187_v8  ;;  %v487_v17 = vld [vmem:[#allocation2 + $0xa8] sm:$0xff]  ;;  %v470_v20 = vld [vmem:[#allocation2 + $0x20] sm:$0xff]  ;;  %s1733_s25 = scalar_lea.vmem [#allocation5], %s914_s24 }
  0x38   : > { %s916_s16 = sshll.u32 %s1823_s14, 3  ;;  %1190 = vmatpush3.bf16.msra.mxu0 %v1189_v12  ;;  %v1193_v18 = vpack.c.bf16 %v469_v15, %v468_v14  ;;  %v1195_v19 = vpack.c.bf16 %v487_v17, %v486_v16  ;;  %v471_v21 = vld [vmem:[#allocation2 + $0x28] sm:$0xff]  ;;  %v488_v23 = vld [vmem:[#allocation2 + $0xb0] sm:$0xff]  ;;  %v489_v24 = vld [vmem:[#allocation2 + $0xb8] sm:$0xff]  ;;  %s834_s27 = sshll.u32 %s1733_s25, 4  ;;  %s1756_s27 = int_to_ptr.vmem [resolvable:$true] %s834_s27 }
  0x39   : > { %s1545_s21 = scalar_lea.vmem %s1803_s0, %s916_s16  ;;  %1192 = vmatprep.subr.bf16.mxu0 %v1191_v13  ;;  %v1197_v25 = vpack.c.bf16 %v471_v21, %v470_v20  ;;  %v1199_v26 = vpack.c.bf16 %v489_v24, %v488_v23  ;;  %v472_v27 = vld [vmem:[#allocation2 + $0x30] sm:$0xff]  ;;  %v473_v28 = vld [vmem:[#allocation2 + $0x38] sm:$0xff]  ;;  %v490_v30 = vld [vmem:[#allocation2 + $0xc0] sm:$0xff]  ;;  %s1754_s30 = scalar_lea.hbm %s1805_s2, %s1018_s26 }
  0x3a   : > { %v1548_v1 = vld [vmem:[%s1545_s21 + $0x8] sm:$0xff]  ;;  %v1551_v2 = vld [vmem:[%s1545_s21] sm:$0xff]  ;;  %v1558_v4 = vld [vmem:[%s1545_s21 + $0x10] sm:$0xff]  ;;  %v1201_v32 = vpack.c.bf16 %v473_v28, %v472_v27  ;;  %s1762_s3 = scalar_lea.sflag [#allocation4], %s150_s23  ;;  %s1363_s13 = scalar_lea.vmem %s1756_s27, 2048 }
  0x3b   : > { %278 = vperm.xlu1 %1311, %v1548_v1   ;;  %275 = vperm.xlu0 %1309, %v1551_v2   ;;  %v1566_v22 = vld [vmem:[%s1545_s21 + $0x18] sm:$0xff]  ;;  %v1571_v29 = vld [vmem:[%s1545_s21 + $0x20] sm:$0xff]  ;;  %v491_v31 = vld [vmem:[#allocation2 + $0xc8] sm:$0xff]  ;;  %p1364_p6 = scmp.ne.s32.totalorder %s1756_s27, %s1363_s13  ;;  %p1816_p9 = scmp.ne.s32.totalorder %s1809_s19, 0 }
  0x3c   : > { %1194 = vmatpush3.bf16.msra.mxu0 %v1193_v18  ;;  %v474_v33 = vld [vmem:[#allocation2 + $0x40] sm:$0xff]  ;;  %v1203_v34 = vpack.c.bf16 %v491_v31, %v490_v30  ;;  %v475_v35 = vld [vmem:[#allocation2 + $0x48] sm:$0xff]  ;;  %v492_v39 = vld [vmem:[#allocation2 + $0xd0] sm:$0xff]  ;;  %v1436_v18 = vmov 2   ;;  %s1438_s4 = smov [#allocation5]  }
  0x3d   : > { %1196 = vmatprep.subr.bf16.mxu0 %v1195_v19  ;;  %v498_v36 = vld [vmem:[#allocation2 + $0x100] sm:$0xff]  ;;  %v499_v37 = vld [vmem:[#allocation2 + $0x108] sm:$0xff]  ;;  %v493_v40 = vld [vmem:[#allocation2 + $0xd8] sm:$0xff]  ;;  %v1205_v42 = vpack.c.bf16 %v475_v35, %v474_v33  ;;  %v1437_v33 = vmov 1.0   ;;  %p1365_p10 = pnand %p1364_p6, %p1816_p9  ;;  %s1367_s5 = sshll.u32 %s1438_s4, 4  ;;  %s1368_s5 = int_to_ptr.vmem [resolvable:$false] %s1367_s5 }
  0x3e   : > { %v1576_v38 = vld [vmem:[%s1545_s21 + $0x28] sm:$0xff]  ;;  %v1219_v41 = vpack.c.bf16 %v499_v37, %v498_v36  ;;  %v476_v43 = vld [vmem:[#allocation2 + $0x50] sm:$0xff]  ;;  %v1207_v44 = vpack.c.bf16 %v493_v40, %v492_v39  ;;  %v477_v45 = vld [vmem:[#allocation2 + $0x58] sm:$0xff]  ;;  %s1369_s6 = scalar_lea.vmem %s1368_s5, 4096  ;;  %p1370_p2 = scmp.lt.s32.totalorder %s1756_s27, %s1368_s5 }
  0x3f   : > { %1312 = vset.pattern.permute.xlu1 %v1435_v3  ;;  %1310 = vset.pattern.permute.xlu0 %v1435_v3  ;;  %v500_v46 = vld [vmem:[#allocation2 + $0x110] sm:$0xff]  ;;  %v501_v47 = vld [vmem:[#allocation2 + $0x118] sm:$0xff]  ;;  %v494_v49 = vld [vmem:[#allocation2 + $0xe0] sm:$0xff]  ;;  %v1209_v52 = vpack.c.bf16 %v477_v45, %v476_v43  ;;  %p1366_p12 = pneg %p1365_p10  ;;  %p1371_p3 = scmp.lt.s32.totalorder %s1369_s6, %s1363_s13 }
  0x40   : > { %182 = vperm.xlu1 %1312, %v1548_v1   ;;  %179 = vperm.xlu0 %1310, %v1551_v2   ;;  %v1581_v48 = vld [vmem:[%s1545_s21 + $0x30] sm:$0xff]  ;;  %v495_v50 = vld [vmem:[#allocation2 + $0xe8] sm:$0xff]  ;;  %v1223_v51 = vpack.c.bf16 %v501_v47, %v500_v46  ;;  %v478_v53 = vld [vmem:[#allocation2 + $0x60] sm:$0xff] }
  0x41   : > { %1198 = vmatpush3.bf16.msra.mxu0 %v1197_v25  ;;  %1220 = vmatprep.subr.bf16.mxu1 %v1219_v41  ;;  %v1211_v54 = vpack.c.bf16 %v495_v50, %v494_v49  ;;  %v479_v55 = vld [vmem:[#allocation2 + $0x68] sm:$0xff]  ;;  %v502_v56 = vld [vmem:[#allocation2 + $0x120] sm:$0xff]  ;;  %v1586_v58 = vld [vmem:[%s1545_s21 + $0x38] sm:$0xff]  ;;  %p1372_p4 = por %p1371_p3, %p1370_p2 }
  0x42   : > { %1200 = vmatprep.subr.bf16.mxu0 %v1199_v26  ;;  %1222 = vmatpush3.bf16.msra.mxu1 %v1219_v41  ;;  %v503_v57 = vld [vmem:[#allocation2 + $0x128] sm:$0xff]  ;;  %v496_v59 = vld [vmem:[#allocation2 + $0xf0] sm:$0xff]  ;;  %v497_v60 = vld [vmem:[#allocation2 + $0xf8] sm:$0xff]  ;;  %v1213_v62 = vpack.c.bf16 %v479_v55, %v478_v53 }
  0x43   : > { %1224 = vmatprep.subr.bf16.mxu1 %v1223_v51  ;;  %v1227_v61 = vpack.c.bf16 %v503_v57, %v502_v56  ;;  %v480_v63 = vld [vmem:[#allocation2 + $0x70] sm:$0xff]  ;;  %v1215_v5 = vpack.c.bf16 %v497_v60, %v496_v59  ;;  %v481_v6 = vld [vmem:[#allocation2 + $0x78] sm:$0xff]  ;;  %v1591_v9 = vld [vmem:[%s1545_s21 + $0x40] sm:$0xff]  ;;  %p1373_p7 = pnand %p1372_p4, %p1366_p12 }
  0x44   : > { %1313 = vset.pattern.permute.xlu1 %v1434_v0  ;;  %185 = vperm.xlu0 %1310, %v1558_v4   ;;  %v504_v7 = vld [vmem:[#allocation2 + $0x130] sm:$0xff]  ;;  %v505_v8 = vld [vmem:[#allocation2 + $0x138] sm:$0xff]  ;;  %v1217_v11 = vpack.c.bf16 %v481_v6, %v480_v63  ;;  %v506_v12 = vld [vmem:[#allocation2 + $0x140] sm:$0xff] }
  0x45   : > { %281 = vperm.xlu1 %1313, %v1558_v4   ;;  %1202 = vmatpush3.bf16.msra.mxu0 %v1201_v32  ;;  %v1231_v10 = vpack.c.bf16 %v505_v8, %v504_v7  ;;  %v507_v13 = vld [vmem:[#allocation2 + $0x148] sm:$0xff]  ;;  %v170_v15 = vld [vmem:[%s1545_s21 + $0x50] sm:$0xff]  ;;  %v509_v17 = vld [vmem:[#allocation2 + $0x158] sm:$0xff] }
  0x46   : > { %1204 = vmatprep.subr.bf16.mxu0 %v1203_v34  ;;  %1226 = vmatpush3.bf16.msra.mxu1 %v1223_v51  ;;  %v1235_v14 = vpack.c.bf16 %v507_v13, %v506_v12  ;;  %v508_v16 = vld [vmem:[#allocation2 + $0x150] sm:$0xff]  ;;  %v172_v20 = vld [vmem:[%s1545_s21 + $0x60] sm:$0xff]  ;;  %v169_v21 = vld [vmem:[%s1545_s21 + $0x48] sm:$0xff] }
  0x47   : > { %1228 = vmatprep.subr.bf16.mxu1 %v1227_v61  ;;  %v1239_v19 = vpack.c.bf16 %v509_v17, %v508_v16  ;;  %v510_v23 = vld [vmem:[#allocation2 + $0x160] sm:$0xff]  ;;  %v511_v24 = vld [vmem:[#allocation2 + $0x168] sm:$0xff]  ;;  %v174_v26 = vld [vmem:[%s1545_s21 + $0x70] sm:$0xff] }
  0x48   : > { %188 = vperm.xlu0 %1310, %v1566_v22   ;;  %v1243_v25 = vpack.c.bf16 %v511_v24, %v510_v23  ;;  %v512_v27 = vld [vmem:[#allocation2 + $0x170] sm:$0xff]  ;;  %v513_v28 = vld [vmem:[#allocation2 + $0x178] sm:$0xff] }
  0x49   : > { %284 = vperm.xlu1 %1313, %v1566_v22   ;;  %1206 = vmatpush3.bf16.msra.mxu0 %v1205_v42  ;;  %v1247_v30 = vpack.c.bf16 %v513_v28, %v512_v27 }
  0x4a   : > { %1208 = vmatprep.subr.bf16.mxu0 %v1207_v44  ;;  %1230 = vmatpush3.bf16.msra.mxu1 %v1227_v61 }
  0x4b   : > { %1232 = vmatprep.subr.bf16.mxu1 %v1231_v10 }
  0x4c   : > { %191 = vperm.xlu0 %1310, %v1571_v29  }
  0x4d   : > { %287 = vperm.xlu1 %1313, %v1571_v29   ;;  %1210 = vmatpush3.bf16.msra.mxu0 %v1209_v52 }
  0x4e   : > { %1212 = vmatprep.subr.bf16.mxu0 %v1211_v54  ;;  %1234 = vmatpush3.bf16.msra.mxu1 %v1231_v10 }
  0x4f   : > { %1236 = vmatprep.subr.bf16.mxu1 %v1235_v14 }
  0x50   : > { %194 = vperm.xlu0 %1310, %v1576_v38  }
  0x51   : > { %290 = vperm.xlu1 %1313, %v1576_v38   ;;  %1214 = vmatpush3.bf16.msra.mxu0 %v1213_v62 }
  0x52   : > { %1216 = vmatprep.subr.bf16.mxu0 %v1215_v5  ;;  %1238 = vmatpush3.bf16.msra.mxu1 %v1235_v14 }
  0x53   : > { %1240 = vmatprep.subr.bf16.mxu1 %v1239_v19 }
  0x54   : > { %197 = vperm.xlu0 %1310, %v1581_v48  }
  0x55   : > { %293 = vperm.xlu1 %1313, %v1581_v48   ;;  %1218 = vmatpush3.bf16.msra.mxu0 %v1217_v11 }
  0x56   : > { %1242 = vmatpush3.bf16.msra.mxu1 %v1239_v19 }
  0x57   : > { %1244 = vmatprep.subr.bf16.mxu1 %v1243_v25 }
  0x58   : > { %200 = vperm.xlu0 %1310, %v1586_v58  }
  0x59   : > { %296 = vperm.xlu1 %1313, %v1586_v58  }
  0x5a   : > { %1246 = vmatpush3.bf16.msra.mxu1 %v1243_v25 }
  0x5b   : > { %1248 = vmatprep.subr.bf16.mxu1 %v1247_v30 }
  0x5c   : > { %203 = vperm.xlu0 %1310, %v1591_v9  }
  0x5d   : > { %299 = vperm.xlu1 %1313, %v1591_v9  }
  0x5e   : > { %1250 = vmatpush3.bf16.msra.mxu1 %v1247_v30 }
  0x60   : > { %1318 = vset.pattern.permute.xlu0 %v1434_v0 }
  0x61   : > { %1314 = vset.pattern.permute.xlu1 %v1436_v18  ;;  %305 = vperm.xlu0 %1318, %v170_v15  }
  0x62   : > { %371 = vperm.xlu1 %1314, %v1551_v2   ;;  %v173_v2 = vld [vmem:[%s1545_s21 + $0x68] sm:$0xff] }
  0x65   : > { %311 = vperm.xlu0 %1318, %v172_v20  }
  0x66   : > { %1315 = vset.pattern.permute.xlu1 %v1434_v0 }
  0x67   : > { %302 = vperm.xlu1 %1315, %v169_v21  }
  0x69   : > { %317 = vperm.xlu0 %1318, %v174_v26  }
  0x6b   : > { %1316 = vset.pattern.permute.xlu1 %v1435_v3 }
  0x6c   : > { %206 = vperm.xlu1 %1316, %v169_v21  }
  0x6d   : > { %1329 = vset.pattern.permute.xlu0 %v1436_v18 }
  0x6e   : > { %374 = vperm.xlu0 %1329, %v1548_v1   ;;  %v171_v1 = vld [vmem:[%s1545_s21 + $0x58] sm:$0xff] }
  0x70   : > { %1317 = vset.pattern.permute.xlu1 %v1436_v18 }
  0x71   : > { %380 = vperm.xlu1 %1317, %v1566_v22   ;;  %v176_v22 = vlaneseq }
  0x72   : > { %377 = vperm.xlu0 %1329, %v1558_v4   ;;  %v175_v4 = vld [vmem:[%s1545_s21 + $0x78] sm:$0xff] }
  0x75   : > { %1319 = vset.pattern.permute.xlu1 %v1435_v3 }
  0x76   : > { %209 = vperm.xlu1 %1319, %v170_v15   ;;  %386 = vperm.xlu0 %1329, %v1576_v38  }
  0x7a   : > { %1320 = vset.pattern.permute.xlu1 %v1436_v18  ;;  %389 = vperm.xlu0 %1329, %v1581_v48  }
  0x7b   : > { %383 = vperm.xlu1 %1320, %v1571_v29   ;;  %v1631_v29 = vand.u32 127, %v176_v22 }
  0x7e   : > { %398 = vperm.xlu0 %1329, %v169_v21  }
  0x7f   : > { %1321 = vset.pattern.permute.xlu1 %v1434_v0 }
  0x80   : > { %308 = vperm.xlu1 %1321, %v171_v1  }
  0x82   : > { %401 = vperm.xlu0 %1329, %v170_v15  }
  0x84   : > { %1322 = vset.pattern.permute.xlu1 %v1435_v3 }
  0x85   : > { %212 = vperm.xlu1 %1322, %v171_v1  }
  0x86   : > { %410 = vperm.xlu0 %1329, %v173_v2  }
  0x89   : > { %1323 = vset.pattern.permute.xlu1 %v1436_v18 }
  0x8a   : > { %392 = vperm.xlu1 %1323, %v1586_v58   ;;  %413 = vperm.xlu0 %1329, %v174_v26  }
  0x8e   : > { %1324 = vset.pattern.permute.xlu1 %v1435_v3 }
  0x8f   : > { %215 = vperm.xlu1 %1324, %v172_v20  }
  0x93   : > { %1325 = vset.pattern.permute.xlu1 %v1436_v18 }
  0x94   : > { %395 = vperm.xlu1 %1325, %v1591_v9  }
  0x98   : > { %1326 = vset.pattern.permute.xlu1 %v1434_v0 }
  0x99   : > { %314 = vperm.xlu1 %1326, %v173_v2  }
  0x9d   : > { %1327 = vset.pattern.permute.xlu1 %v1435_v3 }
  0x9e   : > { %218 = vperm.xlu1 %1327, %v173_v2  }
  0xa2   : > { %1328 = vset.pattern.permute.xlu1 %v1436_v18 }
  0xa3   : > { %404 = vperm.xlu1 %1328, %v171_v1  }
  0xa7   : > { %1330 = vset.pattern.permute.xlu1 %v1435_v3 }
  0xa8   : > { %221 = vperm.xlu1 %1330, %v174_v26  }
  0xac   : > { %1331 = vset.pattern.permute.xlu1 %v1436_v18 }
  0xad   : > { %407 = vperm.xlu1 %1331, %v172_v20  }
  0xb1   : > { %1332 = vset.pattern.permute.xlu1 %v1434_v0 }
  0xb2   : > { %320 = vperm.xlu1 %1332, %v175_v4  }
  0xb6   : > { %1333 = vset.pattern.permute.xlu1 %v1435_v3 }
  0xb7   : > { %224 = vperm.xlu1 %1333, %v175_v4  }
  0xba   : > { %v279_v31 = vpop.permute.xlu1 %278  ;;  %v276_v32 = vpop.permute.xlu0 %275 }
  0xbb   : > { %1334 = vset.pattern.permute.xlu1 %v1436_v18  ;;  %vm322_vm0 = vcmp.eq.s32.totalorder %v276_v32, %v1631_v29  ;;  %vm323_vm2 = vcmp.eq.s32.totalorder %v279_v31, %v1631_v29 }
  0xbc   : > { %416 = vperm.xlu1 %1334, %v175_v4   ;;  %965 = vmatprep.mubr.msk.f32.mxu0 %vm322_vm0, %v1437_v33 }
  0xbf   : > { %v183_v34 = vpop.permute.xlu1 %182  ;;  %v180_v35 = vpop.permute.xlu0 %179 }
  0xc0   : > { %vm226_vm1 = vcmp.eq.s32.totalorder %v180_v35, %v1631_v29  ;;  %vm227_vm3 = vcmp.eq.s32.totalorder %v183_v34, %v1631_v29 }
  0xc1   : > { %966 = vmatmul.mubr.msk.f32.vlgmr.msra.gmra.mrb[0].mxu0 %vm226_vm1, %v1437_v33 }
  0xc2   : > { %967 = vmatprep.mubr.msk.f32.mxu0 %vm323_vm2, %v1437_v33 }
  0xc3   : > { %v186_v0 = vpop.permute.xlu0 %185 }
  0xc4   : > { %v282_v3 = vpop.permute.xlu1 %281  ;;  %vm228_vm5 = vcmp.eq.s32.totalorder %v186_v0, %v1631_v29 }
  0xc5   : > { %vm324_vm4 = vcmp.eq.s32.totalorder %v282_v3, %v1631_v29  ;;  %968 = vmatmul.mubr.msk.f32.gmra.mrb[2].mxu0 %vm227_vm3, %v1437_v33 }
  0xc6   : > { %969 = vmatprep.mubr.msk.f32.mxu0 %vm324_vm4, %v1437_v33 }
  0xc7   : > { %v189_v36 = vpop.permute.xlu0 %188 }
  0xc8   : > { %v285_v37 = vpop.permute.xlu1 %284  ;;  %vm229_vm7 = vcmp.eq.s32.totalorder %v189_v36, %v1631_v29 }
  0xc9   : > { %vm325_vm6 = vcmp.eq.s32.totalorder %v285_v37, %v1631_v29  ;;  %970 = vmatmul.mubr.msk.f32.gmra.mrb[4].mxu0 %vm228_vm5, %v1437_v33 }
  0xca   : > { %971 = vmatprep.mubr.msk.f32.mxu0 %vm325_vm6, %v1437_v33 }
  0xcb   : > { %v192_v38 = vpop.permute.xlu0 %191 }
  0xcc   : > { %v288_v39 = vpop.permute.xlu1 %287  ;;  %vm230_vm9 = vcmp.eq.s32.totalorder %v192_v38, %v1631_v29 }
  0xcd   : > { %vm326_vm8 = vcmp.eq.s32.totalorder %v288_v39, %v1631_v29  ;;  %972 = vmatmul.mubr.msk.f32.gmra.mrb[6].mxu0 %vm229_vm7, %v1437_v33 }
  0xce   : > { %973 = vmatprep.mubr.msk.f32.mxu0 %vm326_vm8, %v1437_v33 }
  0xcf   : > { %v195_v40 = vpop.permute.xlu0 %194 }
  0xd0   : > { %v291_v41 = vpop.permute.xlu1 %290  ;;  %vm231_vm11 = vcmp.eq.s32.totalorder %v195_v40, %v1631_v29 }
  0xd1   : > { %vm327_vm10 = vcmp.eq.s32.totalorder %v291_v41, %v1631_v29  ;;  %974 = vmatmul.mubr.msk.f32.gmra.mrb[8].mxu0 %vm230_vm9, %v1437_v33 }
  0xd2   : > { %975 = vmatprep.mubr.msk.f32.mxu0 %vm327_vm10, %v1437_v33 }
  0xd3   : > { %v198_v42 = vpop.permute.xlu0 %197 }
  0xd4   : > { %v294_v43 = vpop.permute.xlu1 %293  ;;  %vm232_vm13 = vcmp.eq.s32.totalorder %v198_v42, %v1631_v29 }
  0xd5   : > { %vm328_vm12 = vcmp.eq.s32.totalorder %v294_v43, %v1631_v29  ;;  %976 = vmatmul.mubr.msk.f32.gmra.mrb[10].mxu0 %vm231_vm11, %v1437_v33 }
  0xd6   : > { %977 = vmatprep.mubr.msk.f32.mxu0 %vm328_vm12, %v1437_v33 }
  0xd7   : > { %v201_v44 = vpop.permute.xlu0 %200 }
  0xd8   : > { %v297_v45 = vpop.permute.xlu1 %296  ;;  %vm233_vm15 = vcmp.eq.s32.totalorder %v201_v44, %v1631_v29 }
  0xd9   : > { %vm329_vm14 = vcmp.eq.s32.totalorder %v297_v45, %v1631_v29  ;;  %978 = vmatmul.mubr.msk.f32.gmra.mrb[12].mxu0 %vm232_vm13, %v1437_v33 }
  0xda   : > { %979 = vmatprep.mubr.msk.f32.mxu0 %vm329_vm14, %v1437_v33 }
  0xdb   : > { %v204_v46 = vpop.permute.xlu0 %203 }
  0xdc   : > { %v300_v47 = vpop.permute.xlu1 %299  ;;  %vm234_vm1 = vcmp.eq.s32.totalorder %v204_v46, %v1631_v29 }
  0xdd   : > { %vm330_vm0 = vcmp.eq.s32.totalorder %v300_v47, %v1631_v29  ;;  %980 = vmatmul.mubr.msk.f32.gmra.mrb[14].mxu0 %vm233_vm15, %v1437_v33 }
  0xde   : > { %981 = vmatprep.mubr.msk.f32.mxu0 %vm330_vm0, %v1437_v33 }
  0xe0   : > { %v306_v48 = vpop.permute.xlu0 %305 }
  0xe1   : > { %v372_v49 = vpop.permute.xlu1 %371  ;;  %982 = vmatmul.mubr.msk.f32.gmra.mrb[16].mxu0 %vm234_vm1, %v1437_v33  ;;  %vm332_vm4 = vcmp.eq.s32.totalorder %v306_v48, %v1631_v29 }
  0xe2   : > { %vm418_vm2 = vcmp.eq.s32.totalorder %v372_v49, %v1631_v29 }
  0xe3   : > { %1163 = vmatprep.mubr.msk.f32.mxu1 %vm418_vm2, %v1437_v33 }
  0xe4   : > { %v312_v50 = vpop.permute.xlu0 %311 }
  0xe5   : > { %vm334_vm14 = vcmp.eq.s32.totalorder %v312_v50, %v1631_v29 }
  0xe6   : > { %v303_v51 = vpop.permute.xlu1 %302 }
  0xe7   : > { %vm331_vm3 = vcmp.eq.s32.totalorder %v303_v51, %v1631_v29 }
  0xe8   : > { %983 = vmatprep.mubr.msk.f32.mxu0 %vm331_vm3, %v1437_v33  ;;  %v318_v52 = vpop.permute.xlu0 %317 }
  0xeb   : > { %v207_v53 = vpop.permute.xlu1 %206 }
  0xec   : > { %vm235_vm5 = vcmp.eq.s32.totalorder %v207_v53, %v1631_v29 }
  0xed   : > { %984 = vmatmul.mubr.msk.f32.gmra.mrb[18].mxu0 %vm235_vm5, %v1437_v33  ;;  %v375_v54 = vpop.permute.xlu0 %374 }
  0xee   : > { %vm419_vm6 = vcmp.eq.s32.totalorder %v375_v54, %v1631_v29  ;;  %985 = vmatprep.mubr.msk.f32.mxu0 %vm332_vm4, %v1437_v33 }
  0xef   : > { %1164 = vmatmul.mubr.msk.f32.vlgmr.msra.gmra.mrb[0].mxu1 %vm419_vm6, %v1437_v33 }
  0xf0   : > { %v381_v55 = vpop.permute.xlu1 %380 }
  0xf1   : > { %v378_v56 = vpop.permute.xlu0 %377  ;;  %vm421_vm8 = vcmp.eq.s32.totalorder %v381_v55, %v1631_v29 }
  0xf2   : > { %vm420_vm7 = vcmp.eq.s32.totalorder %v378_v56, %v1631_v29 }
  0xf3   : > { %1166 = vmatprep.mubr.msk.f32.mxu1 %vm420_vm7, %v1437_v33  ;;  %vm336_vm7 = vcmp.eq.s32.totalorder %v318_v52, %v1631_v29 }
  0xf4   : > { %1167 = vmatmul.mubr.msk.f32.gmra.mrb[2].mxu1 %vm421_vm8, %v1437_v33 }
  0xf5   : > { %v210_v57 = vpop.permute.xlu1 %209  ;;  %v387_v58 = vpop.permute.xlu0 %386 }
  0xf6   : > { %vm236_vm9 = vcmp.eq.s32.totalorder %v210_v57, %v1631_v29  ;;  %vm423_vm10 = vcmp.eq.s32.totalorder %v387_v58, %v1631_v29 }
  0xf7   : > { %986 = vmatmul.mubr.msk.f32.gmra.mrb[20].mxu0 %vm236_vm9, %v1437_v33 }
  0xf9   : > { %v390_v59 = vpop.permute.xlu0 %389 }
  0xfa   : > { %v384_v60 = vpop.permute.xlu1 %383  ;;  %vm424_vm12 = vcmp.eq.s32.totalorder %v390_v59, %v1631_v29 }
  0xfb   : > { %vm422_vm11 = vcmp.eq.s32.totalorder %v384_v60, %v1631_v29 }
  0xfc   : > { %1169 = vmatprep.mubr.msk.f32.mxu1 %vm422_vm11, %v1437_v33 }
  0xfd   : > { %1170 = vmatmul.mubr.msk.f32.gmra.mrb[4].mxu1 %vm423_vm10, %v1437_v33  ;;  %v399_v5 = vpop.permute.xlu0 %398 }
  0xfe   : > { %1172 = vmatprep.mubr.msk.f32.mxu1 %vm424_vm12, %v1437_v33  ;;  %vm427_vm2 = vcmp.eq.s32.totalorder %v399_v5, %v1631_v29 }
  0xff   : > { %v309_v61 = vpop.permute.xlu1 %308 }
 0x100   : > { %vm333_vm13 = vcmp.eq.s32.totalorder %v309_v61, %v1631_v29 }
 0x101   : > { %987 = vmatprep.mubr.msk.f32.mxu0 %vm333_vm13, %v1437_v33  ;;  %v402_v8 = vpop.permute.xlu0 %401 }
 0x102   : > { %vm428_vm4 = vcmp.eq.s32.totalorder %v402_v8, %v1631_v29 }
 0x104   : > { %v213_v62 = vpop.permute.xlu1 %212 }
 0x105   : > { %vm237_vm15 = vcmp.eq.s32.totalorder %v213_v62, %v1631_v29  ;;  %v411_v12 = vpop.permute.xlu0 %410 }
 0x106   : > { %988 = vmatmul.mubr.msk.f32.gmra.mrb[22].mxu0 %vm237_vm15, %v1437_v33  ;;  %vm431_vm11 = vcmp.eq.s32.totalorder %v411_v12, %v1631_v29 }
 0x107   : > { %989 = vmatprep.mubr.msk.f32.mxu0 %vm334_vm14, %v1437_v33 }
 0x109   : > { %v393_v63 = vpop.permute.xlu1 %392  ;;  %v414_v14 = vpop.permute.xlu0 %413 }
 0x10a   : > { %vm425_vm0 = vcmp.eq.s32.totalorder %v393_v63, %v1631_v29  ;;  %vm432_vm12 = vcmp.eq.s32.totalorder %v414_v14, %v1631_v29 }
 0x10b   : > { %1173 = vmatmul.mubr.msk.f32.gmra.mrb[6].mxu1 %vm425_vm0, %v1437_v33 }
 0x10e   : > { %v216_v6 = vpop.permute.xlu1 %215 }
 0x10f   : > { %vm238_vm1 = vcmp.eq.s32.totalorder %v216_v6, %v1631_v29 }
 0x110   : > { %990 = vmatmul.mubr.msk.f32.gmra.mrb[24].mxu0 %vm238_vm1, %v1437_v33 }
 0x113   : > { %v396_v7 = vpop.permute.xlu1 %395 }
 0x114   : > { %vm426_vm3 = vcmp.eq.s32.totalorder %v396_v7, %v1631_v29 }
 0x115   : > { %1175 = vmatprep.mubr.msk.f32.mxu1 %vm426_vm3, %v1437_v33 }
 0x116   : > { %1176 = vmatmul.mubr.msk.f32.gmra.mrb[8].mxu1 %vm427_vm2, %v1437_v33 }
 0x117   : > { %1178 = vmatprep.mubr.msk.f32.mxu1 %vm428_vm4, %v1437_v33 }
 0x118   : > { %v315_v9 = vpop.permute.xlu1 %314 }
 0x119   : > { %vm335_vm5 = vcmp.eq.s32.totalorder %v315_v9, %v1631_v29 }
 0x11a   : > { %991 = vmatprep.mubr.msk.f32.mxu0 %vm335_vm5, %v1437_v33 }
 0x11d   : > { %v219_v10 = vpop.permute.xlu1 %218 }
 0x11e   : > { %vm239_vm6 = vcmp.eq.s32.totalorder %v219_v10, %v1631_v29 }
 0x11f   : > { %992 = vmatmul.mubr.msk.f32.gmra.mrb[26].mxu0 %vm239_vm6, %v1437_v33 }
 0x120   : > { %993 = vmatprep.mubr.msk.f32.mxu0 %vm336_vm7, %v1437_v33 }
 0x122   : > { %v405_v11 = vpop.permute.xlu1 %404 }
 0x123   : > { %vm429_vm8 = vcmp.eq.s32.totalorder %v405_v11, %v1631_v29 }
 0x124   : > { %1179 = vmatmul.mubr.msk.f32.gmra.mrb[10].mxu1 %vm429_vm8, %v1437_v33 }
 0x127   : > { %v222_v13 = vpop.permute.xlu1 %221 }
 0x128   : > { %vm240_vm9 = vcmp.eq.s32.totalorder %v222_v13, %v1631_v29 }
 0x129   : > { %994 = vmatmul.mubr.msk.f32.gmra.mrb[28].mxu0 %vm240_vm9, %v1437_v33 }
 0x12c   : > { %v408_v15 = vpop.permute.xlu1 %407 }
 0x12d   : > { %vm430_vm10 = vcmp.eq.s32.totalorder %v408_v15, %v1631_v29 }
 0x12e   : > { %1181 = vmatprep.mubr.msk.f32.mxu1 %vm430_vm10, %v1437_v33 }
 0x12f   : > { %1182 = vmatmul.mubr.msk.f32.gmra.mrb[12].mxu1 %vm431_vm11, %v1437_v33 }
 0x130   : > { %1184 = vmatprep.mubr.msk.f32.mxu1 %vm432_vm12, %v1437_v33 }
 0x131   : > { %v321_v16 = vpop.permute.xlu1 %320 }
 0x132   : > { %vm337_vm13 = vcmp.eq.s32.totalorder %v321_v16, %v1631_v29 }
 0x133   : > { %995 = vmatprep.mubr.msk.f32.mxu0 %vm337_vm13, %v1437_v33 }
 0x136   : > { %v225_v17 = vpop.permute.xlu1 %224 }
 0x137   : > { %vm241_vm14 = vcmp.eq.s32.totalorder %v225_v17, %v1631_v29 }
 0x138   : > { %996 = vmatmul.mubr.msk.f32.gmra.mrb[30].mxu0 %vm241_vm14, %v1437_v33 }
 0x13b   : > { %v417_v18 = vpop.permute.xlu1 %416 }
 0x13c   : > { %vm433_vm15 = vcmp.eq.s32.totalorder %v417_v18, %v1631_v29 }
 0x13d   : > { %1185 = vmatmul.mubr.msk.f32.gmra.mrb[14].mxu1 %vm433_vm15, %v1437_v33 }
 0x194   : > { %v1051_v19 = vpop.f32.mrb[0].mxu0 }
 0x195   : > { %v1052_v20 = vpop.f32.mrb[1].mxu0 }
 0x196   : > { %v1053_v21 = vadd.f32 %v1052_v20, %v1051_v19 }
 0x198   : > { %v1054_v23 = vpop.f32.mrb[2].mxu0 }
 0x199   : > { %v1055_v24 = vpop.f32.mrb[3].mxu0 }
 0x19a   : > { %v1056_v25 = vadd.f32 %v1055_v24, %v1054_v23 }
 0x19c   : > { %v1057_v26 = vpop.f32.mrb[4].mxu0 }
 0x19d   : > { %v1058_v27 = vpop.f32.mrb[5].mxu0 }
 0x19e   : > { %v1059_v28 = vadd.f32 %v1058_v27, %v1057_v26 }
 0x1a0   : > { %v1060_v30 = vpop.f32.mrb[6].mxu0 }
 0x1a1   : > { %v1061_v1 = vpop.f32.mrb[7].mxu0 }
 0x1a2   : > { %v1062_v2 = vadd.f32 %v1061_v1, %v1060_v30 }
 0x1a4   : > { %v1063_v4 = vpop.f32.mrb[8].mxu0 }
 0x1a5   : > { %v1064_v22 = vpop.f32.mrb[9].mxu0 }
 0x1a6   : > { %v1065_v31 = vadd.f32 %v1064_v22, %v1063_v4 }
 0x1a8   : > { %v1066_v29 = vpop.f32.mrb[10].mxu0 }
 0x1a9   : > { %v1067_v32 = vpop.f32.mrb[11].mxu0 }
 0x1aa   : > { %v1068_v33 = vadd.f32 %v1067_v32, %v1066_v29 }
 0x1ac   : > { %v1069_v34 = vpop.f32.mrb[12].mxu0 }
 0x1ad   : > { %v1070_v35 = vpop.f32.mrb[13].mxu0 }
 0x1ae   : > { %v1071_v0 = vadd.f32 %v1070_v35, %v1069_v34 }
 0x1b0   : > { %v1072_v3 = vpop.f32.mrb[14].mxu0 }
 0x1b1   : > { %v1073_v36 = vpop.f32.mrb[15].mxu0 }
 0x1b2   : > { %v1074_v37 = vadd.f32 %v1073_v36, %v1072_v3 }
 0x1b4   : > { %v1075_v38 = vpop.f32.mrb[16].mxu0 }
 0x1b5   : > { %v1076_v39 = vpop.f32.mrb[17].mxu0 }
 0x1b6   : > { %v1077_v40 = vadd.f32 %v1076_v39, %v1075_v38 }
 0x1c0   : > { %v1078_v41 = vpop.f32.mrb[18].mxu0 }
 0x1c1   : > { %v1079_v42 = vpop.f32.mrb[19].mxu0 }
 0x1c2   : > { %v1080_v43 = vadd.f32 %v1079_v42, %v1078_v41  ;;  %v1165_v44 = vpop.f32.mrb[0].mxu1 }
 0x1c3   : > { %v731_v45 = vadd.f32 %v1165_v44, %v1056_v25  ;;  %v725_v46 = vpop.f32.mrb[1].mxu1 }
 0x1c4   : > { %v726_v47 = vadd.f32 %v1053_v21, %v725_v46 }
 0x1c5   : > { %805 = vst [vmem:[%s1733_s25 + $0x8] sm:$0xff] %v731_v45 }
 0x1c6   : > { %804 = vst [vmem:[%s1733_s25] sm:$0xff] %v726_v47 }
 0x1c7   : > { %v1168_v48 = vpop.f32.mrb[2].mxu1 }
 0x1c8   : > { %v741_v49 = vadd.f32 %v1168_v48, %v1062_v2  ;;  %v735_v50 = vpop.f32.mrb[3].mxu1 }
 0x1c9   : > { %v736_v51 = vadd.f32 %v1059_v28, %v735_v50 }
 0x1ca   : > { %807 = vst [vmem:[%s1733_s25 + $0x18] sm:$0xff] %v741_v49  ;;  %v1081_v52 = vpop.f32.mrb[20].mxu0 }
 0x1cb   : > { %806 = vst [vmem:[%s1733_s25 + $0x10] sm:$0xff] %v736_v51  ;;  %v1082_v53 = vpop.f32.mrb[21].mxu0 }
 0x1cc   : > { %v1083_v54 = vadd.f32 %v1082_v53, %v1081_v52 }
 0x1d0   : > { %v1171_v55 = vpop.f32.mrb[4].mxu1 }
 0x1d1   : > { %v751_v56 = vadd.f32 %v1171_v55, %v1068_v33  ;;  %v745_v57 = vpop.f32.mrb[5].mxu1 }
 0x1d2   : > { %v746_v58 = vadd.f32 %v1065_v31, %v745_v57 }
 0x1d3   : > { %809 = vst [vmem:[%s1733_s25 + $0x28] sm:$0xff] %v751_v56 }
 0x1d4   : > { %808 = vst [vmem:[%s1733_s25 + $0x20] sm:$0xff] %v746_v58 }
 0x1d9   : > { %v1084_v59 = vpop.f32.mrb[22].mxu0 }
 0x1da   : > { %v1085_v60 = vpop.f32.mrb[23].mxu0 }
 0x1db   : > { %v1086_v61 = vadd.f32 %v1085_v60, %v1084_v59 }
 0x1de   : > { %v1174_v62 = vpop.f32.mrb[6].mxu1 }
 0x1df   : > { %v761_v63 = vadd.f32 %v1174_v62, %v1074_v37  ;;  %v755_v5 = vpop.f32.mrb[7].mxu1 }
 0x1e0   : > { %v756_v6 = vadd.f32 %v1071_v0, %v755_v5 }
 0x1e1   : > { %811 = vst [vmem:[%s1733_s25 + $0x38] sm:$0xff] %v761_v63 }
 0x1e2   : > { %810 = vst [vmem:[%s1733_s25 + $0x30] sm:$0xff] %v756_v6 }
 0x1e3   : > { %v1087_v7 = vpop.f32.mrb[24].mxu0 }
 0x1e4   : > { %v1088_v8 = vpop.f32.mrb[25].mxu0 }
 0x1e5   : > { %v1089_v9 = vadd.f32 %v1088_v8, %v1087_v7 }
 0x1e9   : > { %v1177_v10 = vpop.f32.mrb[8].mxu1 }
 0x1ea   : > { %v771_v11 = vadd.f32 %v1177_v10, %v1080_v43  ;;  %v765_v12 = vpop.f32.mrb[9].mxu1 }
 0x1eb   : > { %v766_v13 = vadd.f32 %v1077_v40, %v765_v12 }
 0x1ec   : > { %813 = vst [vmem:[%s1733_s25 + $0x48] sm:$0xff] %v771_v11 }
 0x1ed   : > { %812 = vst [vmem:[%s1733_s25 + $0x40] sm:$0xff] %v766_v13 }
 0x1f2   : > { %v1090_v14 = vpop.f32.mrb[26].mxu0 }
 0x1f3   : > { %v1091_v15 = vpop.f32.mrb[27].mxu0 }
 0x1f4   : > { %v1092_v16 = vadd.f32 %v1091_v15, %v1090_v14 }
 0x1f7   : > { %v1180_v17 = vpop.f32.mrb[10].mxu1 }
 0x1f8   : > { %v781_v18 = vadd.f32 %v1180_v17, %v1086_v61  ;;  %v775_v19 = vpop.f32.mrb[11].mxu1 }
 0x1f9   : > { %v776_v20 = vadd.f32 %v1083_v54, %v775_v19 }
 0x1fa   : > { %815 = vst [vmem:[%s1733_s25 + $0x58] sm:$0xff] %v781_v18 }
 0x1fb   : > { %814 = vst [vmem:[%s1733_s25 + $0x50] sm:$0xff] %v776_v20 }
 0x1fc   : > { %v1093_v21 = vpop.f32.mrb[28].mxu0 }
 0x1fd   : > { %v1094_v23 = vpop.f32.mrb[29].mxu0 }
 0x1fe   : > { %v1095_v24 = vadd.f32 %v1094_v23, %v1093_v21 }
 0x202   : > { %v1183_v25 = vpop.f32.mrb[12].mxu1 }
 0x203   : > { %v791_v26 = vadd.f32 %v1183_v25, %v1092_v16  ;;  %v785_v27 = vpop.f32.mrb[13].mxu1 }
 0x204   : > { %v786_v28 = vadd.f32 %v1089_v9, %v785_v27 }
 0x205   : > { %817 = vst [vmem:[%s1733_s25 + $0x68] sm:$0xff] %v791_v26 }
 0x206   : > { %816 = vst [vmem:[%s1733_s25 + $0x60] sm:$0xff] %v786_v28 }
 0x20b   : > { %v1096_v30 = vpop.f32.mrb[30].mxu0 }
 0x20c   : > { %v1097_v1 = vpop.f32.mrb[31].mxu0 }
 0x20d   : > { %v1098_v2 = vadd.f32 %v1097_v1, %v1096_v30 }
 0x210   : > { %v1186_v4 = vpop.f32.mrb[14].mxu1 }
 0x211   : > { %v801_v22 = vadd.f32 %v1186_v4, %v1098_v2  ;;  %v795_v31 = vpop.f32.mrb[15].mxu1 }
 0x212   : > { %v796_v29 = vadd.f32 %v1095_v24, %v795_v31 }
 0x213   : > { %819 = vst [vmem:[%s1733_s25 + $0x78] sm:$0xff] %v801_v22 }
 0x214   : > { %818 = vst [vmem:[%s1733_s25 + $0x70] sm:$0xff] %v796_v29 }
 0x215   : > { %1376 = shalt.err (!%p1373_p7)
}
 0x216   : > { %s1377_s7 = scalar_lea.hbm %s1754_s30, 2048  ;;  %s1381_s16 = scalar_lea.hbm %s1805_s2, 4096 }
 0x217   : > { %p1378_p8 = scmp.ne.s32.totalorder %s1754_s30, %s1377_s7  ;;  %p1382_p1 = scmp.lt.u32.totalorder %s1754_s30, %s1805_s2 }
 0x218   : > { %p1383_p0 = scmp.lt.u32.totalorder %s1381_s16, %s1377_s7  ;;  %p1385_p6 = scmp.lt.u32.totalorder %s1377_s7, %s1754_s30 }
 0x219   : > { %p1379_p11 = pnand %p1378_p8, %p1816_p9 }
 0x21a   : > { %p1384_p5 = por %p1383_p0, %p1382_p1 }
 0x21b   : > { %p1380_p13 = pneg %p1379_p11 }
 0x21c   : > { %p1386_p10 = por %p1385_p6, %p1384_p5 }
 0x21e   : > { %p1387_p12 = pnand %p1386_p10, %p1380_p13 }
 0x220   : > { %1390 = shalt.err (!%p1387_p12)
}
 0x221   : > { %s1439_s21 = smov 128   ;;  %s1440_s23 = smov 8  }
 0x222   : > { %1255 = dma.vmem_to_hbm [thread:$0]  (%p1816_p9), %s1756_s27, 2048, %s1754_s30, %s1762_s3, %s1439_s21, %s1439_s21, %s1440_s23  }
 0x223 PF: > { %p1267_p2 = scmp.ge.s32.totalorder %s1429_s12, 2  ;;  %s849_s24 = sand.u32 1, %s1417_s9  }
 0x224   : > { %p1817_p3 = scmp.ne.s32.totalorder %s1810_s20, 0  ;;  %s850_s25 = scalar_lea.sflag [#allocation4], %s849_s24 }
 0x226   : > { %p1262_p4 = pnand %p1267_p2, %p1817_p3 }
 0x228   : > { %1412 = dma.done.wait (!%p1262_p4), %s850_s25, 2048  }
 0x229   : > { %1414 = vsyncadd (!%p1262_p4), %s850_s25, 4294965248  ;;  %p13_p7 = scmp.ge.s32.totalorder %s1481_s15, 4   ;;  %s1818_s9 = smov %s1421_s10 }
 0x22a   : > { %s1819_s10 = smov %s1425_s11  ;;  %s1820_s11 = smov %s1492_s18 }
 0x22b   : > { %s1821_s12 = smov %s1481_s15  ;;  %15 = sbr.rel (!%p13_p7) target bundleno = 4 (0x4), region = 68 }
 0x232   :  { %855 = vsyncpa [#allocation3], 1 }
 0x233   :  { %857 = vsyncpa [#allocation3 + $0x1], 1 }
 0x234   :  { %858 = vsyncpa [#allocation4], 1 }
 0x235   :  { %860 = vsyncpa [#allocation4 + $0x1], 1 }

</bundles_post_ra>
